<compile_context>
chip_gen: v5e
topology: v5e:2x2
jax: 0.10.0
libtpu: 0.0.40
codegen_flags: <defaults>
</compile_context>

<pallas_src>
import functools

import jax
import jax.numpy as jnp
from jax import lax
from jax.experimental import pallas as pl
from jax.experimental.pallas import tpu as pltpu


def mbconv_kernel(x_ref, mask_ref, w1_ref, b1_ref, w2_ref, b2_ref, w3_ref,
                  b3_ref, o_ref, *, W, per_tap, mxu_dtype):
    """One batch-chunk of the fused MBConvBlock forward.

    Layout: channels on sublanes, batch*spatial on lanes.
      x_ref    : (Cin, L) f32   L = block_batch * H * W  (lane-dense)
      mask_ref : (9,  L)  f32   precomputed zero-padding masks, tap-major
      w1_ref   : (Cp, Cin)      conv1 1x1 weight, bn1 scale folded (mxu_dtype)
      w2_ref   : (Cp, 9*Cp)     conv2 3x3 weight, tap-major im2col (mxu_dtype)
      w3_ref   : (Cout, Cp)     conv3 1x1 weight, bn3 scale folded (mxu_dtype)
      b*_ref   : (C, 1) f32     folded BN biases
      o_ref    : (Cout, L) f32
    """
    Cp = w1_ref.shape[0]
    L = x_ref.shape[1]

    x = x_ref[...]                                   # (Cin, L) f32
    mask = mask_ref[...]                             # (9,  L) f32

    # ---- conv1 (1x1) + bn1 + relu ----------------------------------------
    h1 = jnp.dot(w1_ref[...], x.astype(mxu_dtype),
                 preferred_element_type=jnp.float32)
    h1 = jnp.maximum(h1 + b1_ref[...], 0.0)          # (Cp, L) f32

    # ---- conv2 (3x3, stride=1, pad=1, dil=1) + bn2 + relu ------------------
    # A (dy, dx) tap is a lane rotation by dy*W + dx (XLU slot, off the
    # VPU/MXU critical path) plus a precomputed boundary mask (zero padding).
    def tap(t):
        dy, dx = t // 3 - 1, t % 3 - 1
        s = dy * W + dx
        shifted = h1 if s == 0 else pltpu.roll(h1, shift=(-s) % L, axis=1)
        return (shifted * mask[t]).astype(mxu_dtype)

    if per_tap:
        # 9 accumulating K=Cp matmuls: no (9*Cp, L) patch buffer (v7x-friendly).
        w2 = w2_ref[...]
        h2 = jnp.zeros((Cp, L), jnp.float32)
        for t in range(9):
            h2 = h2 + jnp.dot(w2[:, t * Cp:(t + 1) * Cp], tap(t),
                              preferred_element_type=jnp.float32)
    else:
        # Single fused K=9*Cp matmul over an mxu_dtype im2col patch.
        patch = jnp.concatenate([tap(t) for t in range(9)], axis=0)
        h2 = jnp.dot(w2_ref[...], patch, preferred_element_type=jnp.float32)
    h2 = jnp.maximum(h2 + b2_ref[...], 0.0)          # (Cp, L) f32

    # ---- conv3 (1x1) + bn3 + residual + relu -------------------------------
    h3 = jnp.dot(w3_ref[...], h2.astype(mxu_dtype),
                 preferred_element_type=jnp.float32)
    o_ref[...] = jnp.maximum(h3 + b3_ref[...] + x, 0.0)


def _pick_block_batch(N, HW, max_lanes=4096):
    """Largest batch chunk with lane-aligned, VMEM-sized tiles and >=2 steps."""
    cands = [d for d in range(1, N + 1)
             if N % d == 0 and (d * HW) % 128 == 0 and d * HW <= max_lanes]
    if not cands:
        return N
    multi = [d for d in cands if N // d >= 2]   # >=2 grid steps: DMA overlap,
    pool = multi if multi else cands            # and both v7x TensorCores busy
    return max(pool)


def _vmem_bytes(Cin, Cp, Cout, Lb, per_tap, mxu_itemsize):
    f32 = 4
    buf = 2 * (Cin + Cout + 9) * Lb * f32                    # dbl-buffered x/o/mask
    wts = 2 * (Cp * Cin + 9 * Cp * Cp + Cout * Cp) * mxu_itemsize
    wts += 2 * (2 * Cp + Cout) * f32                         # biases
    inter = (2 * Cp + Cout) * Lb * f32                       # h1, h2, h3
    if per_tap:
        inter += Cp * Lb * (f32 + mxu_itemsize)              # accumulator + one tap
    else:
        inter += 9 * Cp * Lb * mxu_itemsize                  # im2col patch
    return buf + wts + inter


def mbconv_block(x, w1, w2, w3, bn1, bn2, bn3, *, eps=1e-5, block_batch=None,
                 per_tap_conv2=None, mxu_dtype=jnp.bfloat16):
    """Fused MBConvBlock forward (stride=1, dilation=1, downsample=None).

    x  : (N, Cin, H, W)      activations, PyTorch NCHW layout
    w1 : (Cp,  Cin, 1, 1)    conv1 weight (OIHW)
    w2 : (Cp,  Cp,  3, 3)    conv2 weight (OIHW)
    w3 : (Cout, Cp, 1, 1)    conv3 weight (OIHW), Cout = 4*Cp
    bn*: (gamma, beta, running_mean, running_var) per-channel tuples
    """
    N, Cin, H, W = x.shape
    Cp = w1.shape[0]
    Cout = w3.shape[0]
    HW = H * W
    assert Cin == Cout, "downsample=None residual needs inplanes == 4*planes"

    mxu_itemsize = jnp.dtype(mxu_dtype).itemsize

    # Fold inference-mode BN into conv weights (wrapper-side, one-time);
    # weights go to the MXU dtype, biases stay f32.
    def fold(w2d, bn):
        gamma, beta, mean, var = bn
        scale = gamma / jnp.sqrt(var + eps)
        bias = beta - mean * scale
        return (w2d * scale[:, None]).astype(mxu_dtype), bias[:, None].astype(jnp.float32)

    w1f, b1 = fold(w1.reshape(Cp, Cin), bn1)
    # (Cp, Cp, 3, 3) -> (Cp, ky, kx, Cin) -> (Cp, 9*Cp): tap-major im2col layout
    w2m, b2 = fold(jnp.transpose(w2, (0, 2, 3, 1)).reshape(Cp, 9 * Cp), bn2)
    w3f, b3 = fold(w3.reshape(Cout, Cp), bn3)

    # Layout plumbing: channels on sublanes, batch*spatial on lanes.
    xl = jnp.transpose(x, (1, 0, 2, 3)).reshape(Cin, N * HW).astype(jnp.float32)

    if block_batch is None:
        block_batch = _pick_block_batch(N, HW)
    assert N % block_batch == 0
    Lb = block_batch * HW
    grid = (N // block_batch,)
    # Lane-dense stores (unmasked vst) unless the block spans the full array.
    assert block_batch == N or Lb % 128 == 0, \
        "choose block_batch so block lanes are a multiple of 128"

    if per_tap_conv2 is None:
        # Per-tap accumulation when the im2col patch would be big (v7x VMEM).
        per_tap_conv2 = (9 * Cp * Lb * mxu_itemsize) > (8 << 20)

    # Precomputed zero-padding masks, one row per 3x3 tap, tiled across the
    # block's images (static per (H, W) — no div/mod inside the kernel).
    hh = jnp.arange(H)[:, None]
    ww = jnp.arange(W)[None, :]
    rows = []
    for ky in range(3):
        for kx in range(3):
            dy, dx = ky - 1, kx - 1
            v = ((hh + dy >= 0) & (hh + dy < H) &
                 (ww + dx >= 0) & (ww + dx < W))
            rows.append(v.reshape(-1))
    mask = jnp.stack(rows).astype(jnp.float32)           # (9, HW)
    mask = jnp.tile(mask, (1, block_batch))               # (9, Lb)

    def full_spec(a):
        nd = a.ndim
        return pl.BlockSpec(a.shape, lambda n, _nd=nd: (0,) * _nd)

    kern = functools.partial(mbconv_kernel, W=W, per_tap=per_tap_conv2,
                             mxu_dtype=mxu_dtype)

    est = _vmem_bytes(Cin, Cp, Cout, Lb, per_tap_conv2, mxu_itemsize)
    vmem_limit = int(min(64 << 20, max(32 << 20, 2 * est + (2 << 20))))

    out = pl.pallas_call(
        kern,
        out_shape=jax.ShapeDtypeStruct((Cout, N * HW), jnp.float32),
        grid_spec=pltpu.PrefetchScalarGridSpec(
            num_scalar_prefetch=0,
            grid=grid,
            in_specs=[
                pl.BlockSpec((Cin, Lb), lambda n: (0, n)),
                full_spec(mask),
                full_spec(w1f), full_spec(b1),
                full_spec(w2m), full_spec(b2),
                full_spec(w3f), full_spec(b3),
            ],
            out_specs=pl.BlockSpec((Cout, Lb), lambda n: (0, n)),
        ),
        compiler_params=pltpu.CompilerParams(
            dimension_semantics=("parallel",),      # batch-chunk axis, no carry
            vmem_limit_bytes=vmem_limit),
    )(xl, mask, w1f, b1, w2m, b2, w3f, b3)

    return jnp.transpose(out.reshape(Cout, N, H, W), (1, 0, 2, 3))


if __name__ == "__main__":
    planes = 4
    inplanes = 4 * planes          # residual requires inplanes == planes * 4
    N, H, W = 2, 16, 16
    eps = 1e-5

    key = jax.random.PRNGKey(0)
    ks = jax.random.split(key, 16)

    x = jax.random.normal(ks[0], (N, inplanes, H, W), jnp.float32)

    w1 = jax.random.normal(ks[1], (planes, inplanes, 1, 1), jnp.float32) * 0.1
    w2 = jax.random.normal(ks[2], (planes, planes, 3, 3), jnp.float32) * 0.1
    w3 = jax.random.normal(ks[3], (4 * planes, planes, 1, 1), jnp.float32) * 0.1

    def bn_params(kg, kb, km, kv, c):
        gamma = jax.random.uniform(kg, (c,), jnp.float32, 0.5, 1.5)
        beta = jax.random.normal(kb, (c,), jnp.float32) * 0.1
        mean = jax.random.normal(km, (c,), jnp.float32) * 0.1
        var = jax.random.uniform(kv, (c,), jnp.float32, 0.5, 1.5)
        return gamma, beta, mean, var

    bn1 = bn_params(ks[4], ks[5], ks[6], ks[7], planes)
    bn2 = bn_params(ks[8], ks[9], ks[10], ks[11], planes)
    bn3 = bn_params(ks[12], ks[13], ks[14], ks[15], 4 * planes)

    # Pure-JAX NCHW reference (inference-mode BN folded the same way as the
    # kernel; `cast_dtype` mirrors the kernel's MXU operand dtype).
    def ref(xv, cast_dtype):
        dn = ("NCHW", "OIHW", "NCHW")

        def fold4(w, bn):
            gamma, beta, mean, var = bn
            scale = gamma / jnp.sqrt(var + eps)
            bias = beta - mean * scale
            return ((w * scale.reshape(-1, 1, 1, 1)).astype(cast_dtype),
                    bias.reshape(1, -1, 1, 1))

        w1f, b1v = fold4(w1, bn1)
        w2f, b2v = fold4(w2, bn2)
        w3f, b3v = fold4(w3, bn3)

        def conv(h, w, pad):
            return lax.conv_general_dilated(
                h.astype(cast_dtype), w, (1, 1), pad, dimension_numbers=dn,
                preferred_element_type=jnp.float32)

        h = jnp.maximum(conv(xv, w1f, "VALID") + b1v, 0.0)
        h = jnp.maximum(conv(h, w2f, ((1, 1), (1, 1))) + b2v, 0.0)
        h = conv(h, w3f, "VALID") + b3v
        return jnp.maximum(h + xv, 0.0)

    # 1) default path: bf16 MXU operands, batch-chunked grid (grid=(2,) here)
    out_bf16 = jax.block_until_ready(
        mbconv_block(x, w1, w2, w3, bn1, bn2, bn3, eps=eps))
    exp_bf16 = jax.block_until_ready(ref(x, jnp.bfloat16))
    assert out_bf16.shape == (N, 4 * planes, H, W)
    assert jnp.allclose(out_bf16, exp_bf16, atol=2e-2, rtol=2e-2), float(
        jnp.max(jnp.abs(out_bf16 - exp_bf16)))

    # 2) f32 MXU, fused K=9*Cp conv2 (v5e/v6e-style) — tight tolerance
    out_f32 = jax.block_until_ready(
        mbconv_block(x, w1, w2, w3, bn1, bn2, bn3, eps=eps,
                     mxu_dtype=jnp.float32, per_tap_conv2=False))
    exp_f32 = jax.block_until_ready(ref(x, jnp.float32))
    assert jnp.allclose(out_f32, exp_f32, atol=1e-4, rtol=1e-4), float(
        jnp.max(jnp.abs(out_f32 - exp_f32)))

    # 3) f32 MXU, per-tap accumulating conv2 (v7x-style) — tight tolerance
    out_tap = jax.block_until_ready(
        mbconv_block(x, w1, w2, w3, bn1, bn2, bn3, eps=eps,
                     mxu_dtype=jnp.float32, per_tap_conv2=True))
    assert jnp.allclose(out_tap, exp_f32, atol=1e-4, rtol=1e-4), float(
        jnp.max(jnp.abs(out_tap - exp_f32)))

    print("KERNEL_OK")
</pallas_src>

<mosaic_0001>
module attributes {stable_mosaic.version = 11 : i64} {
  func.func @mbconv_kernel(%arg0: i32, %arg1: memref<16x256xf32, #tpu.memory_space<vmem>>, %arg2: memref<9x256xf32, #tpu.memory_space<vmem>>, %arg3: memref<4x16xbf16, #tpu.memory_space<vmem>>, %arg4: memref<4x1xf32, #tpu.memory_space<vmem>>, %arg5: memref<4x36xbf16, #tpu.memory_space<vmem>>, %arg6: memref<4x1xf32, #tpu.memory_space<vmem>>, %arg7: memref<16x4xbf16, #tpu.memory_space<vmem>>, %arg8: memref<16x1xf32, #tpu.memory_space<vmem>>, %arg9: memref<16x256xf32, #tpu.memory_space<vmem>>) attributes {dimension_semantics = [#tpu.dimension_semantics<parallel>], iteration_bounds = array<i64: 2>, scalar_prefetch = 0 : i64, scratch_operands = 0 : i64, tpu.core_type = #tpu.core_type<tc>, window_params = [{transform_indices = @transform_0, window_bounds = array<i64: 16, 256>}, {pipeline_mode = #tpu.pipeline_mode<synchronous>, transform_indices = @transform_1, window_bounds = array<i64: 9, 256>}, {pipeline_mode = #tpu.pipeline_mode<synchronous>, transform_indices = @transform_2, window_bounds = array<i64: 4, 16>}, {pipeline_mode = #tpu.pipeline_mode<synchronous>, transform_indices = @transform_3, window_bounds = array<i64: 4, 1>}, {pipeline_mode = #tpu.pipeline_mode<synchronous>, transform_indices = @transform_4, window_bounds = array<i64: 4, 36>}, {pipeline_mode = #tpu.pipeline_mode<synchronous>, transform_indices = @transform_5, window_bounds = array<i64: 4, 1>}, {pipeline_mode = #tpu.pipeline_mode<synchronous>, transform_indices = @transform_6, window_bounds = array<i64: 16, 4>}, {pipeline_mode = #tpu.pipeline_mode<synchronous>, transform_indices = @transform_7, window_bounds = array<i64: 16, 1>}, {transform_indices = @transform_8, window_bounds = array<i64: 16, 256>}]} {
    %c0 = arith.constant 0 : index
    %c0_0 = arith.constant 0 : index
    %0 = vector.load %arg1[%c0, %c0_0] : memref<16x256xf32, #tpu.memory_space<vmem>>, vector<16x256xf32>
    %c0_1 = arith.constant 0 : index
    %c0_2 = arith.constant 0 : index
    %1 = vector.load %arg2[%c0_1, %c0_2] : memref<9x256xf32, #tpu.memory_space<vmem>>, vector<9x256xf32>
    %c0_3 = arith.constant 0 : index
    %c0_4 = arith.constant 0 : index
    %2 = vector.load %arg3[%c0_3, %c0_4] : memref<4x16xbf16, #tpu.memory_space<vmem>>, vector<4x16xbf16>
    %3 = arith.truncf %0 : vector<16x256xf32> to vector<16x256xbf16>
    %cst = arith.constant dense<0.000000e+00> : vector<4x256xf32>
    %4 = tpu.matmul %2, %3, %cst {dimension_numbers = #tpu.dot_dimension_numbers<[1], [0], [0], [1], [0, 0, 1, 1], [], []>} : vector<4x16xbf16>, vector<16x256xbf16>, vector<4x256xf32> -> vector<4x256xf32>
    %c0_5 = arith.constant 0 : index
    %c0_6 = arith.constant 0 : index
    %5 = vector.load %arg4[%c0_5, %c0_6] : memref<4x1xf32, #tpu.memory_space<vmem>>, vector<4x1xf32>
    %6 = vector.broadcast %5 : vector<4x1xf32> to vector<4x256xf32>
    %7 = arith.addf %4, %6 : vector<4x256xf32>
    %cst_7 = arith.constant 0.000000e+00 : f32
    %8 = vector.broadcast %cst_7 : f32 to vector<4x256xf32>
    %9 = arith.maximumf %7, %8 : vector<4x256xf32>
    %c17_i32 = arith.constant 17 : i32
    %10 = tpu.dynamic_rotate %9 by %c17_i32 dim 1 : vector<4x256xf32>, i32 -> vector<4x256xf32>
    %11 = vector.extract_strided_slice %1 {offsets = [0, 0], sizes = [1, 256], strides = [1, 1]} : vector<9x256xf32> to vector<1x256xf32>
    %12 = vector.shape_cast %11 : vector<1x256xf32> to vector<256xf32>
    %13 = vector.shape_cast %12 : vector<256xf32> to vector<1x256xf32>
    %14 = vector.broadcast %13 : vector<1x256xf32> to vector<4x256xf32>
    %15 = arith.mulf %10, %14 : vector<4x256xf32>
    %16 = arith.truncf %15 : vector<4x256xf32> to vector<4x256xbf16>
    %c16_i32 = arith.constant 16 : i32
    %17 = tpu.dynamic_rotate %9 by %c16_i32 dim 1 : vector<4x256xf32>, i32 -> vector<4x256xf32>
    %18 = vector.extract_strided_slice %1 {offsets = [1, 0], sizes = [1, 256], strides = [1, 1]} : vector<9x256xf32> to vector<1x256xf32>
    %19 = vector.shape_cast %18 : vector<1x256xf32> to vector<256xf32>
    %20 = vector.shape_cast %19 : vector<256xf32> to vector<1x256xf32>
    %21 = vector.broadcast %20 : vector<1x256xf32> to vector<4x256xf32>
    %22 = arith.mulf %17, %21 : vector<4x256xf32>
    %23 = arith.truncf %22 : vector<4x256xf32> to vector<4x256xbf16>
    %c15_i32 = arith.constant 15 : i32
    %24 = tpu.dynamic_rotate %9 by %c15_i32 dim 1 : vector<4x256xf32>, i32 -> vector<4x256xf32>
    %25 = vector.extract_strided_slice %1 {offsets = [2, 0], sizes = [1, 256], strides = [1, 1]} : vector<9x256xf32> to vector<1x256xf32>
    %26 = vector.shape_cast %25 : vector<1x256xf32> to vector<256xf32>
    %27 = vector.shape_cast %26 : vector<256xf32> to vector<1x256xf32>
    %28 = vector.broadcast %27 : vector<1x256xf32> to vector<4x256xf32>
    %29 = arith.mulf %24, %28 : vector<4x256xf32>
    %30 = arith.truncf %29 : vector<4x256xf32> to vector<4x256xbf16>
    %c1_i32 = arith.constant 1 : i32
    %31 = tpu.dynamic_rotate %9 by %c1_i32 dim 1 : vector<4x256xf32>, i32 -> vector<4x256xf32>
    %32 = vector.extract_strided_slice %1 {offsets = [3, 0], sizes = [1, 256], strides = [1, 1]} : vector<9x256xf32> to vector<1x256xf32>
    %33 = vector.shape_cast %32 : vector<1x256xf32> to vector<256xf32>
    %34 = vector.shape_cast %33 : vector<256xf32> to vector<1x256xf32>
    %35 = vector.broadcast %34 : vector<1x256xf32> to vector<4x256xf32>
    %36 = arith.mulf %31, %35 : vector<4x256xf32>
    %37 = arith.truncf %36 : vector<4x256xf32> to vector<4x256xbf16>
    %38 = vector.extract_strided_slice %1 {offsets = [4, 0], sizes = [1, 256], strides = [1, 1]} : vector<9x256xf32> to vector<1x256xf32>
    %39 = vector.shape_cast %38 : vector<1x256xf32> to vector<256xf32>
    %40 = vector.shape_cast %39 : vector<256xf32> to vector<1x256xf32>
    %41 = vector.broadcast %40 : vector<1x256xf32> to vector<4x256xf32>
    %42 = arith.mulf %9, %41 : vector<4x256xf32>
    %43 = arith.truncf %42 : vector<4x256xf32> to vector<4x256xbf16>
    %c255_i32 = arith.constant 255 : i32
    %44 = tpu.dynamic_rotate %9 by %c255_i32 dim 1 : vector<4x256xf32>, i32 -> vector<4x256xf32>
    %45 = vector.extract_strided_slice %1 {offsets = [5, 0], sizes = [1, 256], strides = [1, 1]} : vector<9x256xf32> to vector<1x256xf32>
    %46 = vector.shape_cast %45 : vector<1x256xf32> to vector<256xf32>
    %47 = vector.shape_cast %46 : vector<256xf32> to vector<1x256xf32>
    %48 = vector.broadcast %47 : vector<1x256xf32> to vector<4x256xf32>
    %49 = arith.mulf %44, %48 : vector<4x256xf32>
    %50 = arith.truncf %49 : vector<4x256xf32> to vector<4x256xbf16>
    %c241_i32 = arith.constant 241 : i32
    %51 = tpu.dynamic_rotate %9 by %c241_i32 dim 1 : vector<4x256xf32>, i32 -> vector<4x256xf32>
    %52 = vector.extract_strided_slice %1 {offsets = [6, 0], sizes = [1, 256], strides = [1, 1]} : vector<9x256xf32> to vector<1x256xf32>
    %53 = vector.shape_cast %52 : vector<1x256xf32> to vector<256xf32>
    %54 = vector.shape_cast %53 : vector<256xf32> to vector<1x256xf32>
    %55 = vector.broadcast %54 : vector<1x256xf32> to vector<4x256xf32>
    %56 = arith.mulf %51, %55 : vector<4x256xf32>
    %57 = arith.truncf %56 : vector<4x256xf32> to vector<4x256xbf16>
    %c240_i32 = arith.constant 240 : i32
    %58 = tpu.dynamic_rotate %9 by %c240_i32 dim 1 : vector<4x256xf32>, i32 -> vector<4x256xf32>
    %59 = vector.extract_strided_slice %1 {offsets = [7, 0], sizes = [1, 256], strides = [1, 1]} : vector<9x256xf32> to vector<1x256xf32>
    %60 = vector.shape_cast %59 : vector<1x256xf32> to vector<256xf32>
    %61 = vector.shape_cast %60 : vector<256xf32> to vector<1x256xf32>
    %62 = vector.broadcast %61 : vector<1x256xf32> to vector<4x256xf32>
    %63 = arith.mulf %58, %62 : vector<4x256xf32>
    %64 = arith.truncf %63 : vector<4x256xf32> to vector<4x256xbf16>
    %c239_i32 = arith.constant 239 : i32
    %65 = tpu.dynamic_rotate %9 by %c239_i32 dim 1 : vector<4x256xf32>, i32 -> vector<4x256xf32>
    %66 = vector.extract_strided_slice %1 {offsets = [8, 0], sizes = [1, 256], strides = [1, 1]} : vector<9x256xf32> to vector<1x256xf32>
    %67 = vector.shape_cast %66 : vector<1x256xf32> to vector<256xf32>
    %68 = vector.shape_cast %67 : vector<256xf32> to vector<1x256xf32>
    %69 = vector.broadcast %68 : vector<1x256xf32> to vector<4x256xf32>
    %70 = arith.mulf %65, %69 : vector<4x256xf32>
    %71 = arith.truncf %70 : vector<4x256xf32> to vector<4x256xbf16>
    %72 = tpu.concatenate %16, %23, %30, %37, %43, %50, %57, %64, %71 in 0 : vector<4x256xbf16>, vector<4x256xbf16>, vector<4x256xbf16>, vector<4x256xbf16>, vector<4x256xbf16>, vector<4x256xbf16>, vector<4x256xbf16>, vector<4x256xbf16>, vector<4x256xbf16> -> vector<36x256xbf16>
    %c0_8 = arith.constant 0 : index
    %c0_9 = arith.constant 0 : index
    %73 = vector.load %arg5[%c0_8, %c0_9] : memref<4x36xbf16, #tpu.memory_space<vmem>>, vector<4x36xbf16>
    %cst_10 = arith.constant dense<0.000000e+00> : vector<4x256xf32>
    %74 = tpu.matmul %73, %72, %cst_10 {dimension_numbers = #tpu.dot_dimension_numbers<[1], [0], [0], [1], [0, 0, 1, 1], [], []>} : vector<4x36xbf16>, vector<36x256xbf16>, vector<4x256xf32> -> vector<4x256xf32>
    %c0_11 = arith.constant 0 : index
    %c0_12 = arith.constant 0 : index
    %75 = vector.load %arg6[%c0_11, %c0_12] : memref<4x1xf32, #tpu.memory_space<vmem>>, vector<4x1xf32>
    %76 = vector.broadcast %75 : vector<4x1xf32> to vector<4x256xf32>
    %77 = arith.addf %74, %76 : vector<4x256xf32>
    %cst_13 = arith.constant 0.000000e+00 : f32
    %78 = vector.broadcast %cst_13 : f32 to vector<4x256xf32>
    %79 = arith.maximumf %77, %78 : vector<4x256xf32>
    %c0_14 = arith.constant 0 : index
    %c0_15 = arith.constant 0 : index
    %80 = vector.load %arg7[%c0_14, %c0_15] : memref<16x4xbf16, #tpu.memory_space<vmem>>, vector<16x4xbf16>
    %81 = arith.truncf %79 : vector<4x256xf32> to vector<4x256xbf16>
    %cst_16 = arith.constant dense<0.000000e+00> : vector<16x256xf32>
    %82 = tpu.matmul %80, %81, %cst_16 {dimension_numbers = #tpu.dot_dimension_numbers<[1], [0], [0], [1], [0, 0, 1, 1], [], []>} : vector<16x4xbf16>, vector<4x256xbf16>, vector<16x256xf32> -> vector<16x256xf32>
    %c0_17 = arith.constant 0 : index
    %c0_18 = arith.constant 0 : index
    %83 = vector.load %arg8[%c0_17, %c0_18] : memref<16x1xf32, #tpu.memory_space<vmem>>, vector<16x1xf32>
    %84 = vector.broadcast %83 : vector<16x1xf32> to vector<16x256xf32>
    %85 = arith.addf %82, %84 : vector<16x256xf32>
    %86 = arith.addf %85, %0 : vector<16x256xf32>
    %cst_19 = arith.constant 0.000000e+00 : f32
    %87 = vector.broadcast %cst_19 : f32 to vector<16x256xf32>
    %88 = arith.maximumf %86, %87 : vector<16x256xf32>
    %c0_20 = arith.constant 0 : index
    %c0_21 = arith.constant 0 : index
    %89 = vector.load %arg9[%c0_20, %c0_21] : memref<16x256xf32, #tpu.memory_space<vmem>>, vector<16x256xf32>
    tpu.vector_store %arg9[%c0_20, %c0_21], %88 {strides = array<i32>} : memref<16x256xf32, #tpu.memory_space<vmem>>, vector<16x256xf32>,
    return
  }
  func.func @transform_0(%arg0: i32) -> (i32, i32) {
    %c0_i32 = arith.constant 0 : i32
    %c0_i32_0 = arith.constant 0 : i32
    return %c0_i32, %arg0 : i32, i32
  }
  func.func @transform_1(%arg0: i32) -> (i32, i32) {
    %c0_i32 = arith.constant 0 : i32
    %c0_i32_0 = arith.constant 0 : i32
    %c0_i32_1 = arith.constant 0 : i32
    return %c0_i32, %c0_i32_0 : i32, i32
  }
  func.func @transform_2(%arg0: i32) -> (i32, i32) {
    %c0_i32 = arith.constant 0 : i32
    %c0_i32_0 = arith.constant 0 : i32
    %c0_i32_1 = arith.constant 0 : i32
    return %c0_i32, %c0_i32_0 : i32, i32
  }
  func.func @transform_3(%arg0: i32) -> (i32, i32) {
    %c0_i32 = arith.constant 0 : i32
    %c0_i32_0 = arith.constant 0 : i32
    %c0_i32_1 = arith.constant 0 : i32
    return %c0_i32, %c0_i32_0 : i32, i32
  }
  func.func @transform_4(%arg0: i32) -> (i32, i32) {
    %c0_i32 = arith.constant 0 : i32
    %c0_i32_0 = arith.constant 0 : i32
    %c0_i32_1 = arith.constant 0 : i32
    return %c0_i32, %c0_i32_0 : i32, i32
  }
  func.func @transform_5(%arg0: i32) -> (i32, i32) {
    %c0_i32 = arith.constant 0 : i32
    %c0_i32_0 = arith.constant 0 : i32
    %c0_i32_1 = arith.constant 0 : i32
    return %c0_i32, %c0_i32_0 : i32, i32
  }
  func.func @transform_6(%arg0: i32) -> (i32, i32) {
    %c0_i32 = arith.constant 0 : i32
    %c0_i32_0 = arith.constant 0 : i32
    %c0_i32_1 = arith.constant 0 : i32
    return %c0_i32, %c0_i32_0 : i32, i32
  }
  func.func @transform_7(%arg0: i32) -> (i32, i32) {
    %c0_i32 = arith.constant 0 : i32
    %c0_i32_0 = arith.constant 0 : i32
    %c0_i32_1 = arith.constant 0 : i32
    return %c0_i32, %c0_i32_0 : i32, i32
  }
  func.func @transform_8(%arg0: i32) -> (i32, i32) {
    %c0_i32 = arith.constant 0 : i32
    %c0_i32_0 = arith.constant 0 : i32
    return %c0_i32, %arg0 : i32, i32
  }
}

</mosaic_0001>

<bundles_post_ra>
// kernel: tpu_custom_call.1
= control target key start
LH: loop header
LB: loop body
LE: loop exit
PB: predicated region body
PF: predicated region fallthrough
CT: control target
= control target key end

     0   :  { %s1337_s0 = inlined_call_operand.hbm [shape: f32[16,512], index: 0, kind: input, shape index: {}]   ;;  %s1338_s1 = inlined_call_operand.hbm [shape: f32[9,256], index: 1, kind: input, shape index: {}]   ;;  %s1339_s2 = inlined_call_operand.vmem [shape: bf16[4,16], index: 2, kind: input, shape index: {}]   ;;  %s1340_s3 = inlined_call_operand.vmem [shape: f32[4,1], index: 3, kind: input, shape index: {}]   ;;  %s1341_s4 = inlined_call_operand.vmem [shape: bf16[4,36], index: 4, kind: input, shape index: {}]   ;;  %s1342_s5 = inlined_call_operand.vmem [shape: f32[4,1], index: 5, kind: input, shape index: {}]   ;;  %s1343_s6 = inlined_call_operand.vmem [shape: bf16[16,4], index: 6, kind: input, shape index: {}]   ;;  %s1344_s7 = inlined_call_operand.vmem [shape: f32[16,1], index: 7, kind: input, shape index: {}]   ;;  %s1345_s8 = inlined_call_operand.hbm [shape: f32[16,512], index: 8, kind: output, shape index: {}]  }
   0x1   :  { %1349 = sst [smem:[#allocation13_spill]] %s1338_s1 }
   0x2   :  { %13 = vsyncpa [#allocation3], 0 }
   0x3   :  { %15 = vsyncpa [#allocation3 + $0x1], 0 }
   0x4   :  { %16 = vsyncpa [#allocation6], 0 }
   0x5   :  { %17 = vsyncpa [#allocation4], 0 }
   0x6   :  { %19 = vsyncpa [#allocation4 + $0x1], 0  ;;  %s1098_s27 = smov 0   ;;  %s1100_s28 = smov 0  }
   0x7   :  { %s1102_s29 = smov 0   ;;  %s1104_s30 = smov 0  }
   0x8 LB: > { %1350 = sst [smem:[#allocation11_spill]] %s1032_s29  ;;  %s1119_s9 = sadd.s32 4294967295, %s1036_s30   ;;  %s1036_s30 = sphi %s1104_s30, %s1365_s30   ;;  %s1032_s29 = sphi %s1102_s29, %s1362_s29   ;;  %s1028_s28 = sphi %s1100_s28, %s1364_s28   ;;  %s1024_s27 = sphi %s1098_s27, %s1363_s27  }
   0x9   : > { %s801_s10 = sadd.s32 4294967294, %s1036_s30   ;;  %p45_p0 = scmp.ne.s32.totalorder %s1028_s28, %s1024_s27 }
   0xa   : > { %p46_p1 = scmp.eq.s32.totalorder %s1119_s9, 0  ;;  %p216_p2 = scmp.eq.s32.totalorder %s1119_s9, 1 }
   0xb   : > { %p222_p3 = scmp.eq.s32.totalorder %s801_s10, 1  ;;  %p802_p5 = scmp.ge.s32.totalorder %s1036_s30, 1 }
   0xc   : > { %p1128_p4 = por %p46_p1, %p45_p0  ;;  %p229_p7 = scmp.lt.s32.totalorder %s1036_s30, 3 }
   0xd   : > { %p1133_p6 = por %p222_p3, %p45_p0  ;;  %s1353_s1 = sld [smem:[#allocation13_spill]] }
   0xe   : > { %p1141_p8 = pnand %p802_p5, %p229_p7  ;;  %s1038_s17 = smov [#allocation5]  }
   0xf   : > { %s242_s18 = sshll.u32 %s1038_s17, 4  ;;  %s1151_s19 = sadd.s32 1, %s1036_s30   ;;  %s243_s18 = int_to_ptr.vmem [resolvable:$true] %s242_s18 }
  0x10   : > { %p838_p9 = pneg %p1141_p8  ;;  %s1346_s20 = smov 256  }
  0x11   : > { %s1347_s21 = smov 16   ;;  %s29_s22 = ssub.s32 %s1036_s30, %s1151_s19 }
  0x12   : > { %p839_p10 = pnand %p838_p9, %p46_p1  ;;  %s32_s23 = sadd.s32 1, %s1032_s29 }
  0x13   : > { %s240_s15 = sshll.u32 %s1353_s1, 4  ;;  %p30_p12 = scmp.eq.s32.totalorder %s29_s22, 0  ;;  %s241_s15 = int_to_ptr.hbm [resolvable:$true] %s240_s15 }
  0x14   : > { %841 = dma.hbm_to_vmem [thread:$0]  (!%p839_p10), %s241_s15, 512, %s243_s18, [#allocation6], %s1346_s20, %s1346_s20, %s1347_s21  }
  0x15   : > { %p39_p13 = scmp.ne.s32.totalorder %s1032_s29, %s1028_s28  ;;  %p40_p0 = scmp.eq.s32.totalorder %s1036_s30, 0 }
  0x16   : > { %p851_p3 = scmp.lt.s32.totalorder %s1036_s30, 2  ;;  %s274_s26 = sand.u32 1, %s1032_s29  }
  0x17   : > { %s1164_s24 = scalar_select %p30_p12, %s1032_s29, %s32_s23  }
  0x18   : > { %p41_p5 = por %p40_p0, %p39_p13  ;;  %p1168_p7 = por %p216_p2, %p39_p13 }
  0x19   : > { %1355 = sst [smem:[#allocation12_spill]] %s1164_s24  ;;  %s827_s10 = sshll.u32 %s1036_s30, 4 }
  0x1a   : > { %s805_s13 = sshll.u32 %s274_s26, 5  ;;  %s283_s17 = scalar_lea.hbm %s1337_s0, %s827_s10 }
  0x1b   : > { %s284_s18 = sshll.u32 %s283_s17, 4  ;;  %s278_s22 = scalar_lea.vmem [#allocation2], %s805_s13  ;;  %s285_s18 = int_to_ptr.hbm [resolvable:$true] %s284_s18 }
  0x1c   : > { %s286_s20 = sshll.u32 %s278_s22, 4  ;;  %p1179_p9 = pnand %p851_p3, %p41_p5  ;;  %s287_s20 = int_to_ptr.vmem [resolvable:$true] %s286_s20 }
  0x1d   : > { %s275_s21 = scalar_lea.sflag [#allocation3], %s274_s26  ;;  %s936_s1 = sshra.s32 %s285_s18, 4  ;;  %s937_s1 = int_to_ptr.hbm [resolvable:$true] %s936_s1 }
  0x1e   : > { %s938_s24 = scalar_lea.hbm %s937_s1, 32  ;;  %p940_p10 = pneg %p1179_p9 }
  0x1f   : > { %p939_p2 = scmp.ne.s32.totalorder %s937_s1, %s938_s24  ;;  %s943_s14 = scalar_lea.hbm %s1337_s0, 64 }
  0x20   : > { %p944_p0 = scmp.lt.s32.totalorder %s937_s1, %s1337_s0  ;;  %p945_p3 = scmp.lt.s32.totalorder %s943_s14, %s938_s24 }
  0x21   : > { %p941_p12 = pnand %p940_p10, %p939_p2 }
  0x22   : > { %p946_p5 = por %p945_p3, %p944_p0 }
  0x23   : > { %p942_p13 = pneg %p941_p12 }
  0x25   : > { %p947_p11 = pnand %p946_p5, %p942_p13 }
  0x27   : > { %950 = shalt.err (!%p947_p11)
}
  0x28   : > { %s1041_s26 = smov 512   ;;  %s1358_s22 = smov 16  }
  0x29   : > { %s1359_s29 = smov 256   ;;  %298 = sbr.rel (%p1141_p8) target bundleno = 642 (0x282), region = 52 }
  0x2a   : > { %845 = dma.hbm_to_vmem [thread:$0]  (!%p1179_p9), %s285_s18, 512, %s287_s20, %s275_s21, %s1041_s26, %s1359_s29, %s1358_s22  }
  0x2b   : > { %s1198_s10 = sand.u32 (!%p1141_p8), 1, %s1028_s28  }
  0x2c   : > { %s809_s1 = sshll.u32 (!%p1141_p8), %s1198_s10, 5  ;;  %s301_s24 = scalar_lea.sflag (!%p1141_p8), [#allocation3], %s1198_s10 }
  0x2d   : > { %s304_s13 = scalar_lea.vmem (!%p1141_p8), [#allocation2], %s809_s1 }
  0x2e   : > { %1011 = dma.done.wait (%p1128_p4), %s301_s24, 512  }
  0x2f   : > { %1013 = vsyncadd (%p1128_p4), %s301_s24, 4294966784 }
  0x30   : > { %1015 = dma.done.wait (%p46_p1), [#allocation6], 512  }
  0x31   : > { %1017 = vsyncadd (%p46_p1), [#allocation6], 4294966784  ;;  %v1042_v0 = vmov 0   ;;  %v1212_v1 = vld [vmem:[%s304_s13] sm:$0xff]  ;;  %v1214_v2 = vld [vmem:[%s304_s13 + $0x10] sm:$0xff]  ;;  %vm363_vm0 = vcmask 130048   ;;  %v399_v26 = vlaneseq }
  0x32   : > { %901 = vset.pattern.permute.xlu0 %v1042_v0  ;;  %902 = vset.pattern.permute.xlu2 %v1042_v0  ;;  %v1216_v3 = vld [vmem:[%s304_s13 + $0x8] sm:$0xff]  ;;  %v355_v4 = vpack.c.bf16 %v1214_v2, %v1212_v1  ;;  %v1220_v5 = vld [vmem:[%s304_s13 + $0x18] sm:$0xff]  ;;  %v357_v6 = vld [vmem:[%s1340_s3] sm:$0xf]  ;;  %s1043_s21 = smov 127   ;;  %s1044_s18 = smov 111  }
  0x33   : > { %903 = vset.pattern.permute.xlu1 %v1042_v0  ;;  %v356_v7 = vpack.c.bf16 %v1220_v5, %v1216_v3  ;;  %360 = vperm.xlu0 %901, %v357_v6   ;;  %v354_v8 = vld [vmem:[%s1339_s2] sm:$0x3]  ;;  %v1232_v11 = vld [vmem:[#allocation5 + $0x8] sm:$0xff]  ;;  %s1045_s23 = smov 112   ;;  %s1046_s14 = smov 16   ;;  %v1243_v28 = vand.u32 127, %v399_v26 }
  0x34   : > { %374 = vmatpush.bf16.msra.mxu0 %v355_v4  ;;  %v1230_v10 = vld [vmem:[#allocation5] sm:$0xff]  ;;  %v446_v17 = vperm.slane %v1232_v11, 4  ;;  %s1047_s15 = smov 113   ;;  %s1048_s17 = smov 17   ;;  %v458_v32 = vperm.slane %v1232_v11, 5  ;;  %v482_v39 = vperm.slane %v1232_v11, 7 }
  0x35   : > { %387 = vmatpush.bf16.msra.mxu1 %v356_v7  ;;  %v445_v15 = vperm.slane %v1230_v10, 4  ;;  %s1049_s26 = smov 15   ;;  %s1050_s22 = smov 1   ;;  %v635_v25 = vld [vmem:[%s1344_s7] sm:$0xff]  ;;  %vm454_vm1 = vcmp.lt.s32.totalorder %v1243_v28, 127  ;;  %v457_v31 = vperm.slane %v1230_v10, 5 }
  0x36   : > { %vm478_vm2 = vcmp.lt.s32.totalorder %v1243_v28, 112  ;;  %v481_v38 = vperm.slane %v1230_v10, 7  ;;  %vm490_vm3 = vcmp.lt.s32.totalorder %v1243_v28, 111  ;;  %v904_v40 = vld [vmem:[#allocation5 + $0x10] ss:$0 sm:$0xff]  ;;  %vm466_vm4 = vcmp.lt.s32.totalorder %v1243_v28, 113 }
  0x37   : > { %812 = vmatmul.msk.bf16.vlgmr.msra.gmra.mxu0 %vm363_vm0, %v354_v8  ;;  %v905_v41 = vld [vmem:[#allocation5 + $0x18] ss:$0 sm:$0xff]  ;;  %v469_v58 = vperm.slane %v1230_v10, 6  ;;  %v470_v59 = vperm.slane %v1232_v11, 6  ;;  %vm551_vm5 = vcmask 1041408   ;;  %vm413_vm6 = vcmp.lt.s32.totalorder %v1243_v28, 16 }
  0x38   : > { %813 = vmatmul.msk.bf16.vlgmr.msra.gmra.mxu1 %vm363_vm0, %v354_v8  ;;  %vm558_vm7 = vcmask 1043456   ;;  %vm563_vm8 = vcmask 1045504   ;;  %vm401_vm9 = vcmp.lt.s32.totalorder %v1243_v28, 17  ;;  %vm437_vm10 = vcmp.lt.s32.totalorder %v1243_v28, 1 }
  0x39   : > { %vm425_vm11 = vcmp.lt.s32.totalorder %v1243_v28, 15  ;;  %vm593_vm12 = vcmask 293888   ;;  %vm652_vm13 = vcmask 31744  }
  0xa5   : > { %v361_v9 = vpop.permute.xlu0 %360 }
  0xb4   : > { %v376_v12 = vpop.f32.mrf.mxu0 }
  0xb5   : > { %v377_v13 = vadd.f32 %v376_v12, %v361_v9  ;;  %v389_v14 = vpop.f32.mrf.mxu1 }
  0xb6   : > { %v390_v16 = vadd.f32 %v389_v14, %v361_v9 }
  0xb7   : > { %v393_v18 = vmax.f32 %v377_v13, 0.0 }
  0xb8   : > { %v394_v19 = vmax.f32 %v390_v16, 0.0 }
  0xb9   : > { %450 = vrot.lane.b32.xlu0 %v393_v18, %s1043_s21  ;;  %v447_v20 = vmul.f32 %v445_v15, %v393_v18 }
  0xba   : > { %488 = vrot.lane.b32.xlu2 %v394_v19, %s1044_s18  ;;  %452 = vrot.lane.b32.xlu1 %v394_v19, %s1043_s21  ;;  %v448_v21 = vmul.f32 %v446_v17, %v394_v19 }
  0xbc   : > { %v378_v22 = vpop.f32.mrf.mxu0  ;;  %v1236_v23 = vpack.c.bf16 %v448_v21, %v447_v20 }
  0xbd   : > { %v391_v24 = vpop.f32.mrf.mxu1 }
  0xbe   : > { %v523_v62 = vunpack.c.l.b16 %v1236_v23  ;;  %v524_v63 = vunpack.c.h.b16 %v1236_v23 }
  0xc0   : > { %v525_v23 = vpack.c.b16 %v523_v62, %v523_v62 }
  0xc1   : > { %476 = vrot.lane.b32.xlu0 %v394_v19, %s1045_s23 }
  0xc2   : > { %474 = vrot.lane.b32.xlu2 %v393_v18, %s1045_s23  ;;  %486 = vrot.lane.b32.xlu1 %v393_v18, %s1044_s18  ;;  %s986_s18 = scalar_lea.hbm %s1345_s8, 64 }
  0xc9   : > { %409 = vrot.lane.b32.xlu0 %v393_v18, %s1046_s14 }
  0xca   : > { %464 = vrot.lane.b32.xlu2 %v394_v19, %s1047_s15  ;;  %462 = vrot.lane.b32.xlu1 %v393_v18, %s1047_s15 }
  0xd1   : > { %397 = vrot.lane.b32.xlu0 %v394_v19, %s1048_s17 }
  0xd2   : > { %395 = vrot.lane.b32.xlu2 %v393_v18, %s1048_s17  ;;  %411 = vrot.lane.b32.xlu1 %v394_v19, %s1046_s14  ;;  %s829_s17 = sshll.u32 %s1119_s9, 4  ;;  %s703_s9 = scalar_lea.sflag [#allocation4], %s1198_s10 }
  0xd3   : > { %s714_s13 = scalar_lea.hbm %s1345_s8, %s829_s17 }
  0xd4   : > { %s717_s11 = sshll.u32 %s714_s13, 4  ;;  %s718_s11 = int_to_ptr.hbm [resolvable:$true] %s717_s11 }
  0xd9   : > { %421 = vrot.lane.b32.xlu0 %v393_v18, %s1049_s26 }
  0xda   : > { %435 = vrot.lane.b32.xlu2 %v394_v19, %s1050_s22  ;;  %433 = vrot.lane.b32.xlu1 %v393_v18, %s1050_s22 }
  0xe1   : > { %639 = vperm.xlu0 %901, %v635_v25  }
  0xe2   : > { %423 = vrot.lane.b32.xlu1 %v394_v19, %s1049_s26  ;;  %s342_s26 = scalar_lea.vmem [#allocation7], %s809_s1  ;;  %s980_s1 = sshra.s32 %s718_s11, 4  ;;  %s981_s1 = int_to_ptr.hbm [resolvable:$true] %s980_s1 }
  0xe3   : > { %s715_s29 = sshll.u32 %s342_s26, 4  ;;  %s982_s16 = scalar_lea.hbm %s981_s1, 32  ;;  %s716_s29 = int_to_ptr.vmem [resolvable:$true] %s715_s29 }
  0xe4   : > { %p983_p1 = scmp.ne.s32.totalorder %s981_s1, %s982_s16  ;;  %p987_p11 = scmp.lt.s32.totalorder %s981_s1, %s1345_s8 }
  0xe5   : > { %p988_p9 = scmp.lt.s32.totalorder %s986_s18, %s982_s16 }
  0xe6   : > { %p984_p4 = pnand %p983_p1, %p1168_p7 }
  0xe7   : > { %p989_p2 = por %p988_p9, %p987_p11 }
  0xe8   : > { %p985_p8 = pneg %p984_p4 }
  0xea   : > { %p990_p10 = pnand %p989_p2, %p985_p8 }
 0x114   : > { %v489_v27 = vpop.permute.xlu2 %488 }
 0x11c   : > { %v475_v35 = vpop.permute.xlu2 %474 }
 0x124   : > { %v465_v53 = vpop.permute.xlu2 %464 }
 0x12b   : > { %v451_v29 = vpop.permute.xlu0 %450 }
 0x12c   : > { %v453_v30 = vpop.permute.xlu1 %452  ;;  %v396_v26 = vpop.permute.xlu2 %395 }
 0x12d   : > { %v455_v33 = vsel %vm454_vm1, %v451_v29, %v453_v30  ;;  %v456_v34 = vsel %vm454_vm1, %v453_v30, %v451_v29  ;;  %v526_v30 = vpack.c.b16 %v524_v63, %v524_v63 }
 0x12e   : > { %v459_v36 = vmul.f32 %v457_v31, %v455_v33  ;;  %v460_v37 = vmul.f32 %v458_v32, %v456_v34  ;;  %v416_v31 = vperm.slane %v1230_v10, 1  ;;  %v417_v32 = vperm.slane %v1232_v11, 1  ;;  %v587_v33 = vld [vmem:[%s1342_s5] sm:$0xf] }
 0x12f   : > { %590 = vperm.xlu2 %902, %v587_v33  }
 0x130   : > { %v461_v43 = vpack.c.bf16 %v460_v37, %v459_v36 }
 0x132   : > { %v528_v54 = vunpack.c.l.b16 %v461_v43  ;;  %v529_v55 = vunpack.c.h.b16 %v461_v43 }
 0x133   : > { %v477_v42 = vpop.permute.xlu0 %476 }
 0x134   : > { %v487_v44 = vpop.permute.xlu1 %486  ;;  %v479_v45 = vsel %vm478_vm2, %v475_v35, %v477_v42  ;;  %v480_v46 = vsel %vm478_vm2, %v477_v42, %v475_v35  ;;  %v530_v0 = vpack.c.b16 %v528_v54, %v528_v54  ;;  %v531_v4 = vpack.c.b16 %v529_v55, %v529_v55  ;;  %v436_v54 = vpop.permute.xlu2 %435 }
 0x135   : > { %v491_v47 = vsel %vm490_vm3, %v487_v44, %v489_v27  ;;  %v492_v48 = vsel %vm490_vm3, %v489_v27, %v487_v44  ;;  %v483_v49 = vmul.f32 %v481_v38, %v479_v45  ;;  %v484_v50 = vmul.f32 %v482_v39, %v480_v46 }
 0x136   : > { %v495_v51 = vmul.f32 %v904_v40, %v491_v47  ;;  %v496_v52 = vmul.f32 %v905_v41, %v492_v48  ;;  %v532_v20 = vrot.slane %v530_v0, 6  ;;  %v533_v21 = vrot.slane %v531_v4, 6 }
 0x137   : > { %v485_v57 = vpack.c.bf16 %v484_v50, %v483_v49  ;;  %v440_v50 = vperm.slane %v1230_v10, 3 }
 0x138   : > { %v497_v56 = vpack.c.bf16 %v496_v52, %v495_v51  ;;  %v572_v36 = vsel %vm551_vm5, %v525_v23, %v532_v20  ;;  %v575_v38 = vsel %vm551_vm5, %v526_v30, %v533_v21  ;;  %v441_v51 = vperm.slane %v1232_v11, 3 }
 0x139   : > { %v540_v13 = vunpack.c.l.b16 %v485_v57  ;;  %v541_v14 = vunpack.c.h.b16 %v485_v57  ;;  %v404_v52 = vperm.slane %v1230_v10, 0 }
 0x13a   : > { %v547_v60 = vunpack.c.l.b16 %v497_v56  ;;  %v548_v61 = vunpack.c.h.b16 %v497_v56 }
 0x13b   : > { %v410_v19 = vpop.permute.xlu0 %409  ;;  %v542_v24 = vpack.c.b16 %v540_v13, %v540_v13  ;;  %v543_v25 = vpack.c.b16 %v541_v14, %v541_v14 }
 0x13c   : > { %v463_v6 = vpop.permute.xlu1 %462  ;;  %v549_v7 = vpack.c.b16 %v547_v60, %v547_v60  ;;  %v550_v8 = vpack.c.b16 %v548_v61, %v548_v61 }
 0x13d   : > { %v467_v9 = vsel %vm466_vm4, %v463_v6, %v465_v53  ;;  %v468_v12 = vsel %vm466_vm4, %v465_v53, %v463_v6  ;;  %v544_v41 = vrot.slane %v542_v24, 2  ;;  %v545_v42 = vrot.slane %v543_v25, 2 }
 0x13e   : > { %v471_v15 = vmul.f32 %v469_v58, %v467_v9  ;;  %v472_v16 = vmul.f32 %v470_v59, %v468_v12  ;;  %v598_v17 = vsel %vm551_vm5, %v549_v7, 0  ;;  %v601_v18 = vsel %vm551_vm5, %v550_v8, 0 }
 0x13f   : > { %608 = vmatpush.bf16.msra.mxu2 %v598_v17  ;;  %621 = vmatpush.bf16.msra.mxu3 %v601_v18  ;;  %v405_v53 = vperm.slane %v1232_v11, 0  ;;  %v428_v8 = vperm.slane %v1230_v10, 2  ;;  %v429_v9 = vperm.slane %v1232_v11, 2 }
 0x140   : > { %v473_v22 = vpack.c.bf16 %v472_v16, %v471_v15 }
 0x142   : > { %v535_v27 = vunpack.c.l.b16 %v473_v22  ;;  %v536_v29 = vunpack.c.h.b16 %v473_v22 }
 0x143   : > { %v398_v49 = vpop.permute.xlu0 %397 }
 0x144   : > { %v412_v34 = vpop.permute.xlu1 %411  ;;  %v537_v35 = vpack.c.b16 %v535_v27, %v535_v27  ;;  %v538_v37 = vpack.c.b16 %v536_v29, %v536_v29  ;;  %v402_v56 = vsel %vm401_vm9, %v396_v26, %v398_v49  ;;  %v403_v57 = vsel %vm401_vm9, %v398_v49, %v396_v26 }
 0x145   : > { %v414_v39 = vsel %vm413_vm6, %v410_v19, %v412_v34  ;;  %v415_v40 = vsel %vm413_vm6, %v412_v34, %v410_v19  ;;  %v406_v63 = vmul.f32 %v404_v52, %v403_v57  ;;  %v407_v0 = vmul.f32 %v405_v53, %v402_v56 }
 0x146   : > { %v577_v43 = vsel %vm558_vm7, %v572_v36, %v537_v35  ;;  %v579_v44 = vsel %vm558_vm7, %v575_v38, %v538_v37  ;;  %v418_v47 = vmul.f32 %v416_v31, %v415_v40  ;;  %v419_v48 = vmul.f32 %v417_v32, %v414_v39 }
 0x147   : > { %v581_v45 = vsel %vm563_vm8, %v577_v43, %v544_v41  ;;  %v584_v46 = vsel %vm563_vm8, %v579_v44, %v545_v42  ;;  %v408_v12 = vpack.c.bf16 %v407_v0, %v406_v63  ;;  %v586_v42 = vld [vmem:[%s1341_s4] sm:$0x3]  ;;  %v636_v43 = vld [vmem:[%s1344_s7 + $0x8] sm:$0xff] }
 0x148   : > { %609 = vmatpush.bf16.msra.mxu2 %v581_v45  ;;  %622 = vmatpush.bf16.msra.mxu3 %v584_v46  ;;  %v420_v55 = vpack.c.bf16 %v419_v48, %v418_v47 }
 0x149   : > { %v499_v23 = vunpack.c.l.b16 %v408_v12  ;;  %v500_v24 = vunpack.c.h.b16 %v408_v12  ;;  %644 = vperm.xlu1 %903, %v636_v43  }
 0x14a   : > { %v504_v4 = vunpack.c.l.b16 %v420_v55  ;;  %v505_v6 = vunpack.c.h.b16 %v420_v55  ;;  %v828_v55 = vld [vmem:[%s1343_s6] sm:$0xff] }
 0x14b   : > { %v422_v15 = vpop.permute.xlu0 %421  ;;  %v501_v30 = vpack.c.b16 %v499_v23, %v499_v23  ;;  %v502_v31 = vpack.c.b16 %v500_v24, %v500_v24 }
 0x14c   : > { %v434_v58 = vpop.permute.xlu1 %433  ;;  %v506_v13 = vpack.c.b16 %v504_v4, %v504_v4  ;;  %v507_v14 = vpack.c.b16 %v505_v6, %v505_v6 }
 0x14d   : > { %v438_v59 = vsel %vm437_vm10, %v434_v58, %v436_v54  ;;  %v439_v60 = vsel %vm437_vm10, %v436_v54, %v434_v58 }
 0x14e   : > { %v442_v61 = vmul.f32 %v440_v50, %v439_v60  ;;  %v443_v62 = vmul.f32 %v441_v51, %v438_v59  ;;  %v508_v26 = vrot.slane %v506_v13, 6  ;;  %v509_v28 = vrot.slane %v507_v14, 6 }
 0x150   : > { %v444_v7 = vpack.c.bf16 %v443_v62, %v442_v61  ;;  %v554_v35 = vsel %vm551_vm5, %v501_v30, %v508_v26  ;;  %v557_v37 = vsel %vm551_vm5, %v502_v31, %v509_v28 }
 0x152   : > { %v516_v19 = vunpack.c.l.b16 %v444_v7  ;;  %v517_v20 = vunpack.c.h.b16 %v444_v7 }
 0x153   : > { %v640_v58 = vpop.permute.xlu0 %639 }
 0x154   : > { %v424_v16 = vpop.permute.xlu1 %423  ;;  %v518_v27 = vpack.c.b16 %v516_v19, %v516_v19  ;;  %v519_v10 = vpack.c.b16 %v517_v20, %v517_v20 }
 0x155   : > { %v426_v17 = vsel %vm425_vm11, %v422_v15, %v424_v16  ;;  %v427_v18 = vsel %vm425_vm11, %v424_v16, %v422_v15 }
 0x156   : > { %v430_v21 = vmul.f32 %v428_v8, %v427_v18  ;;  %v431_v22 = vmul.f32 %v429_v9, %v426_v17  ;;  %v520_v34 = vrot.slane %v518_v27, 2  ;;  %v521_v36 = vrot.slane %v519_v10, 2 }
 0x158   : > { %v432_v25 = vpack.c.bf16 %v431_v22, %v430_v21 }
 0x15a   : > { %v511_v29 = vunpack.c.l.b16 %v432_v25  ;;  %v512_v11 = vunpack.c.h.b16 %v432_v25 }
 0x15c   : > { %v513_v32 = vpack.c.b16 %v511_v29, %v511_v29  ;;  %v514_v33 = vpack.c.b16 %v512_v11, %v512_v11 }
 0x15e   : > { %v560_v38 = vsel %vm558_vm7, %v554_v35, %v513_v32  ;;  %v562_v39 = vsel %vm558_vm7, %v557_v37, %v514_v33 }
 0x15f   : > { %v565_v40 = vsel %vm563_vm8, %v560_v38, %v520_v34  ;;  %v568_v41 = vsel %vm563_vm8, %v562_v39, %v521_v36 }
 0x160   : > { %610 = vmatpush.bf16.msra.mxu2 %v565_v40  ;;  %623 = vmatpush.bf16.msra.mxu3 %v568_v41 }
 0x163   : > { %814 = vmatmul.msk.bf16.vlgmr.msra.gmra.mxu2 %vm593_vm12, %v586_v42  ;;  %815 = vmatmul.msk.bf16.vlgmr.msra.gmra.mxu3 %vm593_vm12, %v586_v42 }
 0x189   : > { %v591_v44 = vpop.permute.xlu2 %590 }
 0x1bb   : > { %v645_v7 = vpop.permute.xlu1 %644 }
 0x1e6   : > { %v612_v45 = vpop.f32.mrf.mxu2  ;;  %v625_v46 = vpop.f32.mrf.mxu3 }
 0x1e7   : > { %v613_v47 = vadd.f32 %v612_v45, %v591_v44  ;;  %v626_v48 = vadd.f32 %v625_v46, %v591_v44 }
 0x1e9   : > { %v629_v49 = vmax.f32 %v613_v47, 0.0  ;;  %v630_v50 = vmax.f32 %v626_v48, 0.0 }
 0x1eb   : > { %v633_v51 = vpack.c.bf16 %v629_v49, %v629_v49  ;;  %v634_v52 = vpack.c.bf16 %v630_v50, %v630_v50 }
 0x1ed   : > { %v657_v53 = vsel %vm551_vm5, %v633_v51, 0  ;;  %v660_v54 = vsel %vm551_vm5, %v634_v52, 0 }
 0x1ee   : > { %v614_v56 = vpop.f32.mrf.mxu2  ;;  %v627_v57 = vpop.f32.mrf.mxu3  ;;  %669 = vmatpush.bf16.msrb.mxu0 %v657_v53  ;;  %683 = vmatpush.bf16.msrb.mxu1 %v660_v54 }
 0x1f1   : > { %820 = vmatmul.msk.bf16.vlgmr.msrb.gmra.mxu0 %vm652_vm13, %v828_v55  ;;  %821 = vmatmul.msk.bf16.vlgmr.msrb.gmra.mxu1 %vm652_vm13, %v828_v55 }
 0x26e   : > { %v671_v59 = vpop.f32.mrf.mxu0  ;;  %v685_v60 = vpop.f32.mrf.mxu1 }
 0x26f   : > { %v672_v61 = vadd.f32 %v671_v59, %v640_v58  ;;  %v686_v62 = vadd.f32 %v685_v60, %v640_v58 }
 0x271   : > { %v690_v63 = vadd.f32 %v672_v61, %v1212_v1  ;;  %v691_v0 = vadd.f32 %v686_v62, %v1216_v3 }
 0x273   : > { %v694_v4 = vmax.f32 %v690_v63, 0.0  ;;  %v695_v6 = vmax.f32 %v691_v0, 0.0 }
 0x275   : > { %698 = vst [vmem:[%s342_s26] sm:$0xff] %v694_v4 }
 0x276   : > { %699 = vst [vmem:[%s342_s26 + $0x8] sm:$0xff] %v695_v6  ;;  %v673_v8 = vpop.f32.mrf.mxu0  ;;  %v687_v9 = vpop.f32.mrf.mxu1 }
 0x277   : > { %v674_v12 = vadd.f32 %v673_v8, %v645_v7  ;;  %v688_v1 = vadd.f32 %v687_v9, %v645_v7 }
 0x279   : > { %v692_v3 = vadd.f32 %v674_v12, %v1214_v2  ;;  %v693_v13 = vadd.f32 %v688_v1, %v1220_v5 }
 0x27b   : > { %v696_v14 = vmax.f32 %v692_v3, 0.0  ;;  %v697_v15 = vmax.f32 %v693_v13, 0.0 }
 0x27d   : > { %700 = vst [vmem:[%s342_s26 + $0x10] sm:$0xff] %v696_v14 }
 0x27e   : > { %701 = vst [vmem:[%s342_s26 + $0x18] sm:$0xff] %v697_v15 }
 0x27f   : > { %993 = shalt.err (!%p990_p10)
}
 0x280   : > { %s1051_s10 = smov 256   ;;  %s1052_s17 = smov 512  }
 0x281   : > { %836 = dma.vmem_to_hbm [thread:$0]  (%p1168_p7), %s716_s29, 512, %s718_s11, %s703_s9, %s1051_s10, %s1052_s17, %s1046_s14  }
 0x282 PF: > { %s732_s26 = sand.u32 1, %s1024_s27   ;;  %p1360_p12 = scmp.ge.s32.totalorder %s1036_s30, 2 }
 0x283   : > { %s733_s22 = scalar_lea.sflag [#allocation4], %s732_s26 }
 0x284   : > { %p847_p13 = pnand %p1360_p12, %p1133_p6 }
 0x286   : > { %p848_p0 = pneg %p847_p13 }
 0x288   : > { %1019 = dma.done.wait (%p848_p0), %s733_s22, 512  }
 0x289   : > { %1021 = vsyncadd (%p848_p0), %s733_s22, 4294966784  ;;  %s1361_s24 = sld [smem:[#allocation11_spill]]  ;;  %p22_p3 = scmp.ge.s32.totalorder %s1151_s19, 4  }
 0x28a   : > { %s1362_s29 = sld [smem:[#allocation12_spill]]  ;;  %s1363_s27 = smov %s1028_s28 }
 0x28b   : > { %s1365_s30 = smov %s1151_s19  ;;  %24 = sbr.rel (!%p22_p3) target bundleno = 8 (0x8), region = 101 }
 0x28f   : > { %s1364_s28 = smov %s1361_s24 }
 0x290   :  { %739 = vsyncpa [#allocation3], 1 }
 0x291   :  { %741 = vsyncpa [#allocation3 + $0x1], 1 }
 0x292   :  { %742 = vsyncpa [#allocation6], 1 }
 0x293   :  { %743 = vsyncpa [#allocation4], 1 }
 0x294   :  { %745 = vsyncpa [#allocation4 + $0x1], 1 }

</bundles_post_ra>
